<compile_context>
chip_gen: v7x
topology: tpu7x:2x2x1
jax: 0.10.0
libtpu: 0.0.40
codegen_flags: <defaults>
</compile_context>

<pallas_src>
import jax
import jax.numpy as jnp
from jax.experimental import pallas as pl
from jax.experimental.pallas import tpu as pltpu


def _round_up(n, m):
    return ((n + m - 1) // m) * m


def _make_snake_kernel(compute_dtype, approx_recip):
    def _snake_kernel(x_ref, alpha_ref, o_ref):
        # x_ref: (1, C_tile, T_tile) tile; alpha_ref: (1, C_tile, 1) parameter tile.
        a = alpha_ref[...].astype(jnp.float32)               # (1, C_tile, 1)
        if approx_recip:
            inv_a = pl.reciprocal(a + 1e-9, approx=True)      # EUP slot, C elems only
        else:
            inv_a = 1.0 / (a + 1e-9)                          # exact, torch parity
        x = x_ref[...].astype(compute_dtype)                  # (1, C_tile, T_tile)
        s = jnp.sin(a.astype(compute_dtype) * x)              # sin chain in compute_dtype
        y = x.astype(jnp.float32) + inv_a * (s * s).astype(jnp.float32)
        o_ref[...] = y.astype(o_ref.dtype)
    return _snake_kernel


def snake1d(x, alpha, *, c_tile_target=128, t_tile_target=4096,
            compute_dtype=jnp.float32, approx_recip=False):
    """x: (B, C, *spatial) -> same shape/dtype.  alpha: (1, C, 1).

    compute_dtype=jnp.bfloat16 trades exact fp32-parity for ~2x elementwise VPU
    throughput on v6e/v7x (do not use on v5e: no bf16 VPU there)."""
    orig_shape = x.shape
    B, C = orig_shape[0], orig_shape[1]
    x3 = x.reshape(B, C, -1)                 # mirrors torch snake(): flatten trailing dims
    T = x3.shape[2]
    alpha3 = alpha.reshape(1, C, 1)

    itemsize = jnp.dtype(x.dtype).itemsize
    c_quantum = {4: 8, 2: 16, 1: 32}.get(itemsize, 8)   # sublane packing per dtype

    # Tile selection: pad up to tile multiples instead of collapsing to full extents.
    t_tile = _round_up(min(t_tile_target, _round_up(T, 128)), 128)
    c_tile = _round_up(min(c_tile_target, _round_up(C, c_quantum)), c_quantum)
    Tp = _round_up(T, t_tile)
    Cp = _round_up(C, c_tile)

    pad_c, pad_t = Cp - C, Tp - T
    if pad_c or pad_t:
        x3 = jnp.pad(x3, ((0, 0), (0, pad_c), (0, pad_t)))
    if pad_c:
        # Pad alpha with ones: padded rows compute x + sin(x)^2 on zero-padded x -> 0.
        alpha3 = jnp.pad(alpha3, ((0, 0), (0, pad_c), (0, 0)), constant_values=1.0)

    grid = (B, Cp // c_tile, Tp // t_tile)   # T innermost: alpha tile stays resident

    # Explicit VMEM budget: in x2 + out x2 double-buffered blocks + tiny alpha tiles.
    block_bytes = c_tile * t_tile * itemsize
    needed = 4 * block_bytes + 2 * c_tile * jnp.dtype(alpha.dtype).itemsize
    vmem_limit = int(min(max(2 * needed, 16 << 20), 48 << 20))   # v7x-safe cap

    n_elem = B * Cp * Tp
    cost = pl.CostEstimate(
        flops=4 * n_elem,
        transcendentals=n_elem,
        bytes_accessed=2 * n_elem * itemsize + Cp * jnp.dtype(alpha.dtype).itemsize,
    )

    out = pl.pallas_call(
        _make_snake_kernel(compute_dtype, approx_recip),
        out_shape=jax.ShapeDtypeStruct((B, Cp, Tp), x.dtype),
        grid_spec=pltpu.PrefetchScalarGridSpec(
            num_scalar_prefetch=0,
            grid=grid,
            in_specs=[
                pl.BlockSpec((1, c_tile, t_tile), lambda b, c, t: (b, c, t)),
                # constant along b and t -> the tiny alpha tile is not re-fetched per step
                pl.BlockSpec((1, c_tile, 1), lambda b, c, t: (0, c, 0)),
            ],
            out_specs=pl.BlockSpec((1, c_tile, t_tile), lambda b, c, t: (b, c, t)),
        ),
        compiler_params=pltpu.CompilerParams(
            dimension_semantics=("parallel", "parallel", "parallel"),
            vmem_limit_bytes=vmem_limit,
        ),
        cost_estimate=cost,
    )(x3, alpha3)

    if pad_c or pad_t:
        out = out[:, :C, :T]
    return out.reshape(orig_shape)


def snake1d_ref(x, alpha):
    # Pure-JAX reference matching the torch semantics (fp32 internal math).
    shape = x.shape
    x3 = x.reshape(shape[0], shape[1], -1).astype(jnp.float32)
    a = alpha.reshape(1, shape[1], 1).astype(jnp.float32)
    y = x3 + (1.0 / (a + 1e-9)) * jnp.sin(a * x3) ** 2
    return y.astype(x.dtype).reshape(shape)


if __name__ == "__main__":
    key = jax.random.PRNGKey(0)
    k1, k2, k3, k4, k5 = jax.random.split(key, 5)

    # 1) Small shape matching the torch module defaults (alpha initialized to ones).
    B, C, T = 2, 4, 16
    x = jax.random.normal(k1, (B, C, T), dtype=jnp.float32)
    alpha = jnp.ones((1, C, 1), dtype=jnp.float32)
    out = snake1d(x, alpha)
    jax.block_until_ready(out)
    assert out.shape == x.shape and out.dtype == x.dtype
    assert jnp.allclose(out, snake1d_ref(x, alpha), atol=1e-5, rtol=1e-5)

    # 2) (8, 128)-aligned shape with non-trivial alpha (tiled path, no padding).
    B2, C2, T2 = 2, 8, 256
    x2 = jax.random.normal(k2, (B2, C2, T2), dtype=jnp.float32)
    alpha2 = jax.random.uniform(k3, (1, C2, 1), dtype=jnp.float32, minval=0.5, maxval=2.0)
    out2 = snake1d(x2, alpha2)
    jax.block_until_ready(out2)
    assert out2.shape == x2.shape and out2.dtype == x2.dtype
    assert jnp.allclose(out2, snake1d_ref(x2, alpha2), atol=1e-5, rtol=1e-5)

    # 3) Ragged shape (C and T not tile multiples) exercising the pad/slice path.
    B3, C3, T3 = 1, 6, 200
    x3 = jax.random.normal(k4, (B3, C3, T3), dtype=jnp.float32)
    alpha3 = jax.random.uniform(k5, (1, C3, 1), dtype=jnp.float32, minval=0.5, maxval=2.0)
    out3 = snake1d(x3, alpha3)
    jax.block_until_ready(out3)
    assert out3.shape == x3.shape and out3.dtype == x3.dtype
    assert jnp.allclose(out3, snake1d_ref(x3, alpha3), atol=1e-5, rtol=1e-5)

    # 4) bf16 I/O boundary (fp32 internal math) — halves HBM traffic on v5e/v6e.
    x4 = x2.astype(jnp.bfloat16)
    out4 = snake1d(x4, alpha2)
    jax.block_until_ready(out4)
    assert out4.shape == x4.shape and out4.dtype == x4.dtype
    assert jnp.allclose(out4.astype(jnp.float32),
                        snake1d_ref(x4, alpha2).astype(jnp.float32),
                        atol=3e-2, rtol=3e-2)

    print("KERNEL_OK")
</pallas_src>

<mosaic_0001>
module attributes {stable_mosaic.version = 11 : i64} {
  func.func @_snake_kernel(%arg0: i32, %arg1: i32, %arg2: i32, %arg3: memref<1x8x128xf32, #tpu.memory_space<vmem>>, %arg4: memref<1x8x1xf32, #tpu.memory_space<vmem>>, %arg5: memref<1x8x128xf32, #tpu.memory_space<vmem>>) attributes {dimension_semantics = [#tpu.dimension_semantics<parallel>, #tpu.dimension_semantics<parallel>, #tpu.dimension_semantics<parallel>], iteration_bounds = array<i64: 2, 1, 1>, scalar_prefetch = 0 : i64, scratch_operands = 0 : i64, tpu.core_type = #tpu.core_type<tc>, window_params = [{transform_indices = @transform_0, window_bounds = array<i64: 1, 8, 128>}, {transform_indices = @transform_1, window_bounds = array<i64: 1, 8, 1>}, {transform_indices = @transform_2, window_bounds = array<i64: 1, 8, 128>}]} {
    %c0 = arith.constant 0 : index
    %c0_0 = arith.constant 0 : index
    %c0_1 = arith.constant 0 : index
    %0 = vector.load %arg4[%c0, %c0_0, %c0_1] : memref<1x8x1xf32, #tpu.memory_space<vmem>>, vector<1x8x1xf32>
    %cst = arith.constant 9.99999971E-10 : f32
    %1 = vector.broadcast %cst : f32 to vector<1x8x1xf32>
    %2 = arith.addf %0, %1 : vector<1x8x1xf32>
    %cst_2 = arith.constant 1.000000e+00 : f32
    %3 = vector.broadcast %cst_2 : f32 to vector<1x8x1xf32>
    %4 = arith.divf %3, %2 : vector<1x8x1xf32>
    %c0_3 = arith.constant 0 : index
    %c0_4 = arith.constant 0 : index
    %c0_5 = arith.constant 0 : index
    %5 = vector.load %arg3[%c0_3, %c0_4, %c0_5] : memref<1x8x128xf32, #tpu.memory_space<vmem>>, vector<1x8x128xf32>
    %6 = vector.broadcast %0 : vector<1x8x1xf32> to vector<1x8x128xf32>
    %7 = arith.mulf %6, %5 : vector<1x8x128xf32>
    %8 = math.sin %7 : vector<1x8x128xf32>
    %9 = arith.mulf %8, %8 : vector<1x8x128xf32>
    %10 = vector.broadcast %4 : vector<1x8x1xf32> to vector<1x8x128xf32>
    %11 = arith.mulf %10, %9 : vector<1x8x128xf32>
    %12 = arith.addf %5, %11 : vector<1x8x128xf32>
    %c0_6 = arith.constant 0 : index
    %c0_7 = arith.constant 0 : index
    %c0_8 = arith.constant 0 : index
    %13 = vector.load %arg5[%c0_6, %c0_7, %c0_8] : memref<1x8x128xf32, #tpu.memory_space<vmem>>, vector<1x8x128xf32>
    tpu.vector_store %arg5[%c0_6, %c0_7, %c0_8], %12 {strides = array<i32>} : memref<1x8x128xf32, #tpu.memory_space<vmem>>, vector<1x8x128xf32>,
    return
  }
  func.func @transform_0(%arg0: i32, %arg1: i32, %arg2: i32) -> (i32, i32, i32) {
    %c0_i32 = arith.constant 0 : i32
    return %arg0, %arg1, %arg2 : i32, i32, i32
  }
  func.func @transform_1(%arg0: i32, %arg1: i32, %arg2: i32) -> (i32, i32, i32) {
    %c0_i32 = arith.constant 0 : i32
    %c0_i32_0 = arith.constant 0 : i32
    %c0_i32_1 = arith.constant 0 : i32
    return %c0_i32, %arg1, %c0_i32_0 : i32, i32, i32
  }
  func.func @transform_2(%arg0: i32, %arg1: i32, %arg2: i32) -> (i32, i32, i32) {
    %c0_i32 = arith.constant 0 : i32
    return %arg0, %arg1, %arg2 : i32, i32, i32
  }
}

</mosaic_0001>

<bundles_post_ra>
// kernel: tpu_custom_call.1
= control target key start
LH: loop header
LB: loop body
LE: loop exit
PB: predicated region body
PF: predicated region fallthrough
CT: control target
= control target key end

     0   :  { %7 = vsyncpa [#allocation3], 0  ;;  %s885_s0 = inlined_call_operand.hbm [shape: f32[2,8,128], index: 0, kind: input, shape index: {}]   ;;  %s886_s1 = inlined_call_operand.vmem [shape: f32[1,8,1], index: 1, kind: input, shape index: {}]   ;;  %s887_s2 = inlined_call_operand.hbm [shape: f32[2,8,128], index: 2, kind: output, shape index: {}]  }
   0x1   :  { %9 = vsyncpa [#allocation3 + $0x1], 0 }
   0x2   :  { %10 = vsyncpa [#allocation4], 0 }
   0x3   :  { %12 = vsyncpa [#allocation4 + $0x1], 0  ;;  %s681_s9 = smov 0   ;;  %s683_s10 = smov 0  }
   0x4   :  { %s685_s11 = smov 0   ;;  %s687_s12 = smov 0  }
   0x5   :  { %s689_s13 = smov 0   ;;  %s691_s14 = smov 0  }
   0x6 LB: > { %s445_s15 = sadd.s32 4294967295, %s655_s14   ;;  %s446_s16 = sadd.s32 4294967294, %s655_s14   ;;  %s655_s14 = sphi %s691_s14, %s18_s14   ;;  %s651_s13 = sphi %s689_s13, %s903_s13   ;;  %s647_s12 = sphi %s687_s12, %s902_s12   ;;  %s643_s11 = sphi %s685_s11, %s901_s11   ;;  %s639_s10 = sphi %s683_s10, %s900_s10   ;;  %s635_s9 = sphi %s681_s9, %s899_s9  }
   0x7   : > { %s37_s17 = sadd.s32 1, %s651_s13  ;;  %s48_s18 = sadd.s32 1, %s643_s11 }
   0x8   : > { %p39_p0 = scmp.ge.s32.totalorder %s37_s17, 2  ;;  %p55_p1 = scmp.ne.s32.totalorder %s643_s11, %s639_s10 }
   0x9   : > { %p56_p2 = scmp.eq.s32.totalorder %s655_s14, 0  ;;  %p61_p3 = scmp.ne.s32.totalorder %s639_s10, %s635_s9 }
   0xa   : > { %s905_s17 = smov (%p39_p0, %s37_s17), 0  ;;  %p62_p5 = scmp.eq.s32.totalorder %s445_s15, 0 }
   0xb   : > { %p722_p4 = por %p56_p2, %p55_p1  ;;  %s41_s20 = ssub.s32 %s651_s13, %s905_s17 }
   0xc   : > { %p115_p6 = scmp.eq.s32.totalorder %s445_s15, 1  ;;  %p46_p7 = scmp.eq.s32.totalorder %s41_s20, 0 }
   0xd   : > { %p728_p8 = por %p62_p5, %p61_p3  ;;  %p121_p10 = scmp.eq.s32.totalorder %s446_s16, 1 }
   0xe   : > { %p732_p9 = por %p115_p6, %p55_p1  ;;  %p479_p13 = scmp.lt.s32.totalorder %s655_s14, 2 }
   0xf   : > { %s737_s23 = scalar_select %p46_p7, %s643_s11, %s48_s18  }
  0x10   : > { %s891_s22 = scalar_select %p732_p9, 1, 0 }
  0x11   : > { %p739_p11 = por %p121_p10, %p61_p3  ;;  %s148_s25 = sand.u32 1, %s643_s11  }
  0x12   : > { %s450_s26 = sshll.u32 %s148_s25, 3  ;;  %s451_s27 = sshll.u32 %s651_s13, 7 }
  0x13   : > { %s892_s24 = scalar_select %p739_p11, 1, 0 }
  0x14   : > { %s750_s30 = scalar_lea.hbm %s885_s0, %s451_s27  ;;  %s152_s3 = scalar_lea.vmem [#allocation2], %s450_s26 }
  0x15   : > { %s161_s4 = sshll.u32 %s152_s3, 4  ;;  %p756_p0 = pnand %p479_p13, %p722_p4  ;;  %s752_s4 = int_to_ptr.vmem [resolvable:$true] %s161_s4 }
  0x16   : > { %s149_s6 = scalar_lea.sflag [#allocation3], %s148_s25  ;;  %s543_s7 = scalar_lea.hbm %s750_s30, 128 }
  0x17   : > { %p544_p3 = scmp.ne.s32.totalorder %s750_s30, %s543_s7  ;;  %p545_p5 = pneg %p756_p0 }
  0x18   : > { %s548_s16 = scalar_lea.hbm %s885_s0, 256  ;;  %p549_p4 = scmp.lt.u32.totalorder %s750_s30, %s885_s0 }
  0x19   : > { %p546_p6 = pnand %p545_p5, %p544_p3  ;;  %p550_p10 = scmp.lt.u32.totalorder %s548_s16, %s543_s7 }
  0x1a   : > { %p552_p12 = scmp.lt.u32.totalorder %s543_s7, %s750_s30 }
  0x1b   : > { %p547_p7 = pneg %p546_p6  ;;  %p551_p13 = por %p550_p10, %p549_p4 }
  0x1d   : > { %p553_p1 = por %p552_p12, %p551_p13 }
  0x1f   : > { %p554_p2 = pnand %p553_p1, %p547_p7 }
  0x21   : > { %557 = shalt.err (!%p554_p2)
}
  0x22   : > { %s558_s20 = scalar_lea.vmem %s752_s4, 128  ;;  %s657_s25 = smov [#allocation2]  }
  0x23   : > { %p559_p3 = scmp.ne.s32.totalorder %s752_s4, %s558_s20  ;;  %s563_s26 = sshll.u32 %s657_s25, 4  ;;  %s564_s26 = int_to_ptr.vmem [resolvable:$false] %s563_s26 }
  0x24   : > { %s565_s27 = scalar_lea.vmem %s564_s26, 256  ;;  %p566_p9 = scmp.lt.s32.totalorder %s752_s4, %s564_s26 }
  0x25   : > { %p561_p6 = pnand %p559_p3, %p545_p5  ;;  %p567_p4 = scmp.lt.s32.totalorder %s565_s27, %s558_s20 }
  0x27   : > { %p562_p11 = pneg %p561_p6  ;;  %p568_p10 = por %p567_p4, %p566_p9 }
  0x29   : > { %p569_p12 = pnand %p568_p10, %p562_p11 }
  0x2b   : > { %572 = shalt.err (!%p569_p12)
}
  0x2c   : > { %474 = dma.hbm_to_vmem [thread:$0]  (!%p756_p0), %s750_s30, 128, %s752_s4, %s149_s6  }
  0x2d   : > { %p894_p1 = scmp.lt.s32.totalorder %s655_s14, 3  ;;  %p895_p2 = scmp.ge.s32.totalorder %s655_s14, 1 }
  0x2f   : > { %p167_p5 = pnand %p895_p2, %p894_p1 }
  0x30   : > { %s792_s28 = sand.u32 (!%p167_p5), 1, %s639_s10  }
  0x31   : > { %170 = sbr.rel (%p167_p5) target bundleno = 288 (0x120), region = 28  ;;  %s453_s29 = sshll.u32 (!%p167_p5), %s792_s28, 3 }
  0x32   : > { %s173_s3 = scalar_lea.sflag (!%p167_p5), [#allocation3], %s792_s28  ;;  %s176_s5 = scalar_lea.vmem (!%p167_p5), [#allocation2], %s453_s29 }
  0x38   : > { %626 = dma.done.wait (%p728_p8), %s173_s3, 128  }
  0x39   : > { %628 = vsyncadd (%p728_p8), %s173_s3, 4294967168  ;;  %v658_v0 = vmov 0   ;;  %v205_v1 = vld [vmem:[%s886_s1] sm:$0xff]  ;;  %v659_v17 = vmov 683565275   ;;  %s460_s21 = sshll.u32 %s647_s12, 7 }
  0x3a   : > { %536 = vset.pattern.permute.xlu0 %v658_v0  ;;  %v206_v2 = vadd.f32 1e-09, %v205_v1  ;;  %v805_v4 = vld [vmem:[%s176_s5] sm:$0xff]  ;;  %v660_v19 = vmov 2475754826   ;;  %s200_s6 = scalar_lea.vmem [#allocation5], %s453_s29  ;;  %s836_s16 = scalar_lea.hbm %s887_s2, %s460_s21 }
  0x3b   : > { %212 = vperm.xlu0 %536, %v205_v1   ;;  %v661_v22 = vmov 2131351028   ;;  %v662_v25 = vmov 2102212464   ;;  %v663_v28 = vmov 920167782  }
  0x3c   : > { %537 = vrcp.f32 %v206_v2  ;;  %v664_v31 = vmov 1326507024   ;;  %s345_s7 = sshll.u32 %s200_s6, 4  ;;  %s330_s18 = scalar_lea.sflag [#allocation4], %s792_s28  ;;  %s838_s7 = int_to_ptr.vmem [resolvable:$true] %s345_s7 }
  0x3d   : > { %s573_s19 = scalar_lea.vmem %s838_s7, 128  ;;  %p896_p9 = scmp.ne.s32.totalorder %s891_s22, 0 }
  0x3e   : > { %p574_p8 = scmp.ne.s32.totalorder %s838_s7, %s573_s19  ;;  %s665_s12 = smov [#allocation5]  }
  0x3f   : > { %s577_s20 = sshll.u32 %s665_s12, 4  ;;  %s578_s20 = int_to_ptr.vmem [resolvable:$false] %s577_s20 }
  0x40   : > { %p575_p11 = pnand %p574_p8, %p896_p9  ;;  %s579_s25 = scalar_lea.vmem %s578_s20, 256 }
  0x41   : > { %p580_p7 = scmp.lt.s32.totalorder %s838_s7, %s578_s20  ;;  %p581_p13 = scmp.lt.s32.totalorder %s579_s25, %s573_s19 }
  0x42   : > { %p576_p0 = pneg %p575_p11 }
  0x43   : > { %p582_p3 = por %p581_p13, %p580_p7 }
  0x45   : > { %p583_p6 = pnand %p582_p3, %p576_p0 }
  0x46   : > { %v538_v3 = vpop.eup %537 }
  0x47   : > { %323 = vperm.xlu0 %536, %v538_v3  }
  0xba   : > { %v213_v5 = vpop.permute.xlu0 %212 }
  0xbb   : > { %v808_v6 = vmul.f32 %v213_v5, %v805_v4 }
  0xbd   : > { %v219_v7 = vand.u32 2139095040, %v808_v6  ;;  %v216_v11 = vand.u32 2147483647, %v808_v6  ;;  %vm218_vm7 = vcmp.lt.s32.totalorder %v808_v6, 0  ;;  %vm308_vm12 = vweird.f32 %v808_v6 }
  0xbf   : > { %v220_v8 = vshrl.u32 %v219_v7, 23  ;;  %v223_v14 = vand.u32 8388607, %v216_v11  ;;  %vm217_vm8 = vcmp.le.f32.partialorder %v216_v11, 0.7853982 }
  0xc1   : > { %v455_v9 = vadd.s32 4294967169, %v220_v8  ;;  %v224_v33 = vor.u32 8388608, %v223_v14 }
  0xc3   : > { %v226_v10 = vadd.s32 1, %v455_v9  ;;  %v264_v47 = vshll.u32 %v224_v33, 8 }
  0xc5   : > { %vm227_vm0 = vcmp.gt.s32.totalorder %v226_v10, 0 }
  0xc6   : > { %v228_v12 = vsel %vm227_vm0, %v226_v10, 0 }
  0xc7   : > { %v230_v13 = vand.u32 31, %v228_v12  ;;  %v229_v16 = vshrl.u32 %v228_v12, 5 }
  0xc9   : > { %v231_v15 = vsub.s32 32, %v230_v13  ;;  %v233_v18 = vshll.u32 %v659_v17, %v230_v13  ;;  %v236_v20 = vshll.u32 %v660_v19, %v230_v13  ;;  %v239_v24 = vshll.u32 %v661_v22, %v230_v13 }
  0xca   : > { %v242_v27 = vshll.u32 %v662_v25, %v230_v13  ;;  %v245_v30 = vshll.u32 %v663_v28, %v230_v13  ;;  %vm248_vm1 = vcmp.lt.s32.totalorder %v229_v16, 1  ;;  %vm251_vm2 = vcmp.lt.s32.totalorder %v229_v16, 4 }
  0xcb   : > { %v234_v21 = vshrl.u32 %v660_v19, %v231_v15  ;;  %v237_v23 = vshrl.u32 %v661_v22, %v231_v15  ;;  %v240_v26 = vshrl.u32 %v662_v25, %v231_v15  ;;  %v243_v29 = vshrl.u32 %v663_v28, %v231_v15 }
  0xcc   : > { %v246_v32 = vshrl.u32 %v664_v31, %v231_v15  ;;  %v232_v42 = vshrl.u32 %v659_v17, %v231_v15  ;;  %vm250_vm3 = vcmp.lt.s32.totalorder %v229_v16, 3  ;;  %vm249_vm4 = vcmp.lt.s32.totalorder %v229_v16, 2 }
  0xcd   : > { %v235_v34 = vor.u32 %v234_v21, %v233_v18  ;;  %v238_v35 = vor.u32 %v237_v23, %v236_v20  ;;  %v241_v36 = vor.u32 %v240_v26, %v239_v24  ;;  %v244_v37 = vor.u32 %v243_v29, %v242_v27 }
  0xce   : > { %v247_v38 = vor.u32 %v246_v32, %v245_v30 }
  0xcf   : > { %v253_v39 = vsel %vm251_vm2, %v241_v36, 2102212464  ;;  %v256_v40 = vsel %vm248_vm1, %v235_v34, %v238_v35  ;;  %v260_v41 = vsel %vm248_vm1, %v238_v35, %v241_v36  ;;  %v257_v43 = vsel %vm251_vm2, %v244_v37, 920167782 }
  0xd0   : > { %v261_v44 = vsel %vm251_vm2, %v247_v38, 1326507024  ;;  %v258_v45 = vsel %vm250_vm3, %v241_v36, %v257_v43  ;;  %v252_v48 = vsel %vm248_vm1, %v232_v42, %v235_v34  ;;  %v254_v49 = vsel %vm250_vm3, %v238_v35, %v253_v39 }
  0xd1   : > { %v262_v46 = vsel %vm250_vm3, %v244_v37, %v261_v44  ;;  %v259_v50 = vsel %vm249_vm4, %v256_v40, %v258_v45  ;;  %v255_v56 = vsel %vm249_vm4, %v252_v48, %v254_v49  ;;  %v324_v37 = vpop.permute.xlu0 %323 }
  0xd2   : > { %v263_v51 = vsel %vm249_vm4, %v260_v41, %v262_v46  ;;  %v817_v54 = vmul.u32.u64.low %v264_v47, %v259_v50  ;;  %v818_v55 = vmul.u32.u64.high %v264_v47, %v259_v50, %v817_v54  ;;  %v271_v58 = vmul.u32 %v264_v47, %v255_v56 }
  0xd3   : > { %v814_v52 = vmul.u32.u64.low %v264_v47, %v263_v51  ;;  %v815_v53 = vmul.u32.u64.high %v264_v47, %v263_v51, %v814_v52 }
  0xd4   : > { %v274_v57 = vadd.s32 1, %v818_v55 }
  0xd5   : > { %vm273_vm5 = vc.u32 %v815_v53, %v817_v54  ;;  %v272_v8 = vadd.s32 %v817_v54, %v815_v53 }
  0xd6   : > { %v275_v59 = vsel %vm273_vm5, %v274_v57, %v818_v55 }
  0xd7   : > { %v276_v60 = vadd.s32 %v275_v59, %v271_v58 }
  0xd9   : > { %v277_v61 = vadd.s32 536870912, %v276_v60 }
  0xdb   : > { %v278_v62 = vshrl.u32 %v277_v61, 30 }
  0xdd   : > { %v279_v63 = vshll.u32 %v278_v62, 30  ;;  %v302_v21 = vsub.s32 4, %v278_v62 }
  0xdf   : > { %v280_v0 = vsub.s32 %v276_v60, %v279_v63  ;;  %v303_v24 = vsel %vm218_vm7, %v302_v21, %v278_v62 }
  0xe0   : > { %v305_v26 = vsel %vm217_vm8, 0, %v303_v24 }
  0xe1   : > { %v282_v1 = vsub.s32 0, %v280_v0  ;;  %v309_v27 = vadd.s32 3, %v305_v26 }
  0xe3   : > { %v456_v2 = vmin.u32 %v282_v1, %v280_v0  ;;  %v310_v28 = vand.u32 3, %v309_v27 }
  0xe5   : > { %v284_v3 = vclz %v456_v2  ;;  %vm315_vm9 = vcmp.eq.s32.totalorder %v310_v28, 2  ;;  %vm312_vm10 = vcmp.eq.s32.totalorder %v310_v28, 0  ;;  %vm311_vm11 = vcmp.lt.s32.totalorder %v310_v28, 2 }
  0xe7   : > { %v457_v5 = vadd.s32 4294967294, %v284_v3 }
  0xe9   : > { %vm458_vm6 = vcmp.lt.s32.totalorder %v457_v5, 0 }
  0xea   : > { %v287_v7 = vsel %vm458_vm6, 0, %v457_v5 }
  0xeb   : > { %v288_v9 = vsub.s32 32, %v287_v7  ;;  %v292_v10 = vsub.s32 4294967266, %v287_v7  ;;  %v289_v12 = vshll.u32 %v280_v0, %v287_v7 }
  0xed   : > { %v290_v13 = vshrl.u32 %v272_v8, %v288_v9  ;;  %v293_v14 = vadd.s32 127, %v292_v10 }
  0xef   : > { %v291_v15 = vor.u32 %v290_v13, %v289_v12  ;;  %v294_v16 = vshll.u32 %v293_v14, 23 }
  0xf1   : > { %v295_v17 = vor.u32 4788187, %v294_v16  ;;  %v298_v19 = vcvt.s32.f32 %v291_v15 }
  0xf3   : > { %v296_v18 = vand.u32 2147483647, %v295_v17 }
  0xf5   : > { %v299_v20 = vmul.f32 %v298_v19, %v296_v18 }
  0xf7   : > { %v300_v22 = vxor.u32 2147483648, %v299_v20 }
  0xf9   : > { %v301_v23 = vsel %vm218_vm7, %v300_v22, %v299_v20 }
  0xfa   : > { %v304_v25 = vsel %vm217_vm8, %v808_v6, %v301_v23 }
  0xfb   : > { %539 = vcosq.f32 %v304_v25 }
  0xfc   : > { %541 = vsinq.f32 %v304_v25 }
 0x105   : > { %v540_v29 = vpop.eup %539 }
 0x106   : > { %v542_v30 = vpop.eup %541  ;;  %v316_v31 = vxor.u32 2147483648, %v540_v29 }
 0x107   : > { %v313_v32 = vxor.u32 2147483648, %v542_v30 }
 0x108   : > { %v317_v33 = vsel %vm315_vm9, %v316_v31, %v542_v30 }
 0x109   : > { %v314_v11 = vsel %vm312_vm10, %v540_v29, %v313_v32 }
 0x10a   : > { %v318_v34 = vsel %vm311_vm11, %v314_v11, %v317_v33 }
 0x10b   : > { %v319_v35 = vsel %vm308_vm12, nan, %v318_v34 }
 0x10c   : > { %v320_v36 = vmul.f32 %v319_v35, %v319_v35 }
 0x10e   : > { %v326_v38 = vmul.f32 %v324_v37, %v320_v36 }
 0x110   : > { %v327_v39 = vadd.f32 %v326_v38, %v805_v4 }
 0x112   : > { %328 = vst [vmem:[%s200_s6] sm:$0xff] %v327_v39 }
 0x113   : > { %586 = shalt.err (!%p583_p6)
}
 0x114   : > { %s587_s26 = scalar_lea.hbm %s836_s16, 128  ;;  %s591_s29 = scalar_lea.hbm %s887_s2, 256 }
 0x115   : > { %p588_p4 = scmp.ne.s32.totalorder %s836_s16, %s587_s26  ;;  %p592_p1 = scmp.lt.u32.totalorder %s836_s16, %s887_s2 }
 0x116   : > { %p593_p2 = scmp.lt.u32.totalorder %s591_s29, %s587_s26  ;;  %p595_p8 = scmp.lt.u32.totalorder %s587_s26, %s836_s16 }
 0x117   : > { %p589_p10 = pnand %p588_p4, %p896_p9 }
 0x118   : > { %p594_p5 = por %p593_p2, %p592_p1 }
 0x119   : > { %p590_p12 = pneg %p589_p10 }
 0x11a   : > { %p596_p11 = por %p595_p8, %p594_p5 }
 0x11c   : > { %p597_p0 = pnand %p596_p11, %p590_p12 }
 0x11e   : > { %600 = shalt.err (!%p597_p0)
}
 0x11f   : > { %469 = dma.vmem_to_hbm [thread:$0]  (%p896_p9), %s838_s7, 128, %s836_s16, %s330_s18  }
 0x120 PF: > { %s357_s30 = sand.u32 1, %s635_s9   ;;  %p897_p7 = scmp.ne.s32.totalorder %s892_s24, 0 }
 0x121   : > { %p898_p13 = scmp.ge.s32.totalorder %s655_s14, 2  ;;  %s358_s4 = scalar_lea.sflag [#allocation4], %s357_s30 }
 0x123   : > { %p476_p3 = pnand %p898_p13, %p897_p7 }
 0x125   : > { %630 = dma.done.wait (!%p476_p3), %s358_s4, 128  }
 0x126   : > { %632 = vsyncadd (!%p476_p3), %s358_s4, 4294967168  ;;  %s18_s14 = sadd.s32 1, %s655_s14   ;;  %s899_s9 = smov %s639_s10 }
 0x127   : > { %p15_p6 = scmp.ge.s32.totalorder %s18_s14, 4   ;;  %s900_s10 = smov %s643_s11 }
 0x128   : > { %s901_s11 = smov %s737_s23  ;;  %s902_s12 = smov %s651_s13 }
 0x129   : > { %s903_s13 = smov %s905_s17  ;;  %17 = sbr.rel (!%p15_p6) target bundleno = 6 (0x6), region = 76 }
 0x130   :  { %363 = vsyncpa [#allocation3], 1 }
 0x131   :  { %365 = vsyncpa [#allocation3 + $0x1], 1 }
 0x132   :  { %366 = vsyncpa [#allocation4], 1 }
 0x133   :  { %368 = vsyncpa [#allocation4 + $0x1], 1 }

</bundles_post_ra>
